<compile_context>
chip_gen: v7x
topology: tpu7x:2x2x1
jax: 0.10.0
libtpu: 0.0.40
codegen_flags: <defaults>
</compile_context>

<pallas_src>
import functools

import jax
import jax.numpy as jnp
from jax.experimental import pallas as pl
from jax.experimental.pallas import tpu as pltpu


def _quadnet_kernel(num_layers, how_fat, xT_ref, *refs):
    """Transposed (batch-on-lanes) forward.

    Ref layout for L = num_layers >= 2 (params pre-folded host-side):
      refs[0]               W_cat^T, (F*(L-1)+1, D_in): rows are
                            [(w_lin0+w_skip0)^T | w_skip1^T | ... | w_skip{L-1}^T]
      refs[1 : L-1]         middle main weights transposed, (F, F) each
      refs[L-1]             last-layer main weight as a column, (F, 1)
      refs[L : 2L-1]        merged biases of layers 0..L-2, (F, 1) each
      refs[2L-1]            merged last-layer bias, (1, 1)
      refs[2L]              out_ref, (1, TB)
    For L == 1 it degenerates to [w_cat^T (1, D_in), bias (1, 1), out_ref].
    """
    L = num_layers
    F = how_fat
    out_ref = refs[-1]
    xT = xT_ref[...].astype(jnp.float32)          # (D_in, TB), batch on lanes

    if L == 1:
        w_cat, b0 = refs[0], refs[1]
        s = jnp.dot(w_cat[...], xT, preferred_element_type=jnp.float32)
        out_ref[...] = s + b0[...]
        return

    n_mid = L - 2
    w_cat = refs[0]
    w_mid = refs[1:1 + n_mid]
    w_last = refs[1 + n_mid]                      # (F, 1)
    biases = refs[2 + n_mid:2 + n_mid + (L - 1)]  # (F, 1) each, layers 0..L-2
    b_last = refs[-2]                             # (1, 1)

    # ONE x0 matmul: layer-0 main+skip and every later skip projection.
    # Result is lane-dense (batch on lanes); per-layer slices are
    # sublane-aligned (F is a multiple of 8), so they are free.
    s_all = jnp.dot(w_cat[...], xT, preferred_element_type=jnp.float32)  # (cat, TB)

    # Layer 0 (skip already folded into rows 0..F-1 of w_cat).
    y = s_all[0:F, :] + biases[0][...]
    y = y * y
    acc = y                                       # (F, TB) merged-sum accumulator
    x = y
    off = F

    # Middle layers 1 .. L-2 (squared, + prevx skip-connection).
    for i in range(1, L - 1):
        prevx = x
        y = jnp.dot(w_mid[i - 1][...], x, preferred_element_type=jnp.float32)
        y = y + biases[i][...] + s_all[off:off + F, :]
        y = y * y
        y = y + prevx
        acc = acc + y
        x = y
        off += F

    # Last layer (width 1, not squared): fold its dot product into the
    # accumulator so the whole net needs a single cross-sublane reduce.
    acc = acc + x * w_last[...]
    total = jnp.sum(acc, axis=0, keepdims=True)   # (1, TB), lane-dense
    out_ref[...] = total + b_last[...] + s_all[off:off + 1, :]


def init_params(key, input_length, num_layers, how_fat, scale=0.1):
    widths = [input_length] + [how_fat] * (num_layers - 1) + [1]
    keys = jax.random.split(key, 4 * num_layers)
    w_lin, b_lin, w_skip, b_skip = [], [], [], []
    k = 0
    for i in range(num_layers):
        w_lin.append(scale * jax.random.normal(keys[k], (widths[i], widths[i + 1]), jnp.float32)); k += 1
        b_lin.append(scale * jax.random.normal(keys[k], (1, widths[i + 1]), jnp.float32)); k += 1
    for i in range(num_layers):
        w_skip.append(scale * jax.random.normal(keys[k], (widths[0], widths[i + 1]), jnp.float32)); k += 1
        b_skip.append(scale * jax.random.normal(keys[k], (1, widths[i + 1]), jnp.float32)); k += 1
    return w_lin, b_lin, w_skip, b_skip


def _fold_params(params, num_layers):
    """Host-side algebraic folding into the transposed kernel layout:
    layer-0 skip folded into the main weight, both merged into the
    concatenated skip matmul; merged per-layer biases as (out, 1) columns."""
    w_lin, b_lin, w_skip, b_skip = params
    L = num_layers
    b_m = [(b_lin[i] + b_skip[i]).T for i in range(L)]           # (out_i, 1)
    if L == 1:
        return [(w_lin[0] + w_skip[0]).T, b_m[0]]                # (1, D_in), (1, 1)
    w0 = w_lin[0] + w_skip[0]                                    # (D_in, F)
    w_cat_T = jnp.concatenate([w0] + [w_skip[i] for i in range(1, L)], axis=1).T
    w_mid_T = [w_lin[i].T for i in range(1, L - 1)]              # (F, F)
    w_last_col = w_lin[L - 1]                                    # (F, 1)
    return [w_cat_T] + w_mid_T + [w_last_col] + b_m[:-1] + [b_m[-1]]


def _pick_batch_tile(batch, block_batch):
    # Single tile for small batches (block dims equal to the full array dims
    # are always layout-legal).
    if batch <= 256:
        return batch
    # Lane-dense 128-aligned tiles.  Aim for >= 2 tiles so v7x megacore can
    # shard the batch axis, but keep tiles large (<= block_batch) to amortize
    # the ~0.35us per-grid-step overhead on v5e/v6e.
    half = -(-batch // 2)
    tile = ((half + 127) // 128) * 128
    return min(block_batch, tile)


def quadnet_forward(x, params, num_layers, block_batch=2048):
    L = num_layers
    B, D_in = x.shape
    how_fat = params[0][0].shape[1] if L >= 2 else 1
    flat = _fold_params(params, L)
    xT = x.T                                                     # (D_in, B) lane-dense batch

    TB = _pick_batch_tile(B, block_batch)
    grid = (pl.cdiv(B, TB),)

    cat = how_fat * (L - 1) + 1 if L >= 2 else 1
    mm_flops = 2 * B * (D_in * cat + max(L - 2, 0) * how_fat * how_fat)
    vpu_flops = 6 * B * how_fat * max(L - 1, 0)
    param_bytes = sum(int(p.size) * p.dtype.itemsize for p in flat)
    cost = pl.CostEstimate(
        flops=int(mm_flops + vpu_flops),
        transcendentals=0,
        bytes_accessed=int((B * D_in + B) * 4 + param_bytes),
    )

    kernel = functools.partial(_quadnet_kernel, L, how_fat)
    in_specs = [pl.BlockSpec((D_in, TB), lambda i: (0, i))] + [
        pl.BlockSpec(memory_space=pltpu.MemorySpace.VMEM) for _ in flat
    ]
    out = pl.pallas_call(
        kernel,
        out_shape=jax.ShapeDtypeStruct((1, B), jnp.float32),
        grid=grid,
        in_specs=in_specs,
        out_specs=pl.BlockSpec((1, TB), lambda i: (0, i)),
        compiler_params=pltpu.CompilerParams(
            dimension_semantics=("parallel",)),
        cost_estimate=cost,
    )(xT, *flat)
    return out[0]                                                # (B,)


def quadnet_reference(x, params, num_layers):
    """Pure-JAX reference mirroring the PyTorch forward (unfolded params)."""
    w_lin, b_lin, w_skip, b_skip = params
    inputx = x
    output = jnp.zeros((x.shape[0],), jnp.float32)
    for i in range(num_layers):
        prevx = x
        y = x @ w_lin[i] + b_lin[i][0]
        y = y + (inputx @ w_skip[i] + b_skip[i][0])
        if i < num_layers - 1:
            y = y * y
            if i > 0:
                y = y + prevx
        output = output + jnp.sum(y, axis=1)
        x = y
    return output


if __name__ == "__main__":
    # Small, forward-consistent shapes: x is (batch, input_length).
    batch = 8
    input_length = 16
    how_fat = 32
    num_layers = 3

    key = jax.random.PRNGKey(0)
    kx, kp = jax.random.split(key)
    x = jax.random.normal(kx, (batch, input_length), jnp.float32)
    params = init_params(kp, input_length, num_layers, how_fat, scale=0.1)

    out = jax.block_until_ready(quadnet_forward(x, params, num_layers))
    ref = quadnet_reference(x, params, num_layers)
    assert out.shape == (batch,)
    assert jnp.allclose(out, ref, rtol=1e-5, atol=1e-5), (out, ref)

    # Also exercise the multi-tile (megacore) path with a ragged batch tail.
    xb = jax.random.normal(kx, (300, input_length), jnp.float32)
    outb = jax.block_until_ready(quadnet_forward(xb, params, num_layers))
    refb = quadnet_reference(xb, params, num_layers)
    assert jnp.allclose(outb, refb, rtol=1e-5, atol=1e-4), (outb, refb)

    print("KERNEL_OK")
</pallas_src>

<mosaic_0001>
module attributes {stable_mosaic.version = 11 : i64} {
  func.func @_quadnet_kernel(%arg0: i32, %arg1: memref<16x8xf32, #tpu.memory_space<vmem>>, %arg2: memref<65x16xf32, #tpu.memory_space<vmem>>, %arg3: memref<32x32xf32, #tpu.memory_space<vmem>>, %arg4: memref<32x1xf32, #tpu.memory_space<vmem>>, %arg5: memref<32x1xf32, #tpu.memory_space<vmem>>, %arg6: memref<32x1xf32, #tpu.memory_space<vmem>>, %arg7: memref<1x1xf32, #tpu.memory_space<vmem>>, %arg8: memref<1x8xf32, #tpu.memory_space<vmem>>) attributes {dimension_semantics = [#tpu.dimension_semantics<parallel>], iteration_bounds = array<i64: 1>, scalar_prefetch = 0 : i64, scratch_operands = 0 : i64, tpu.core_type = #tpu.core_type<tc>, window_params = [{transform_indices = @transform_0, window_bounds = array<i64: 16, 8>}, {pipeline_mode = #tpu.pipeline_mode<synchronous>, transform_indices = @transform_1, window_bounds = array<i64: 65, 16>}, {pipeline_mode = #tpu.pipeline_mode<synchronous>, transform_indices = @transform_2, window_bounds = array<i64: 32, 32>}, {pipeline_mode = #tpu.pipeline_mode<synchronous>, transform_indices = @transform_3, window_bounds = array<i64: 32, 1>}, {pipeline_mode = #tpu.pipeline_mode<synchronous>, transform_indices = @transform_4, window_bounds = array<i64: 32, 1>}, {pipeline_mode = #tpu.pipeline_mode<synchronous>, transform_indices = @transform_5, window_bounds = array<i64: 32, 1>}, {pipeline_mode = #tpu.pipeline_mode<synchronous>, transform_indices = @transform_6, window_bounds = array<i64: 1, 1>}, {transform_indices = @transform_7, window_bounds = array<i64: 1, 8>}]} {
    %c0 = arith.constant 0 : index
    %c0_0 = arith.constant 0 : index
    %0 = vector.load %arg1[%c0, %c0_0] : memref<16x8xf32, #tpu.memory_space<vmem>>, vector<16x8xf32>
    %c0_1 = arith.constant 0 : index
    %c0_2 = arith.constant 0 : index
    %1 = vector.load %arg2[%c0_1, %c0_2] : memref<65x16xf32, #tpu.memory_space<vmem>>, vector<65x16xf32>
    %cst = arith.constant dense<0.000000e+00> : vector<65x8xf32>
    %2 = tpu.matmul %1, %0, %cst {dimension_numbers = #tpu.dot_dimension_numbers<[1], [0], [0], [1], [0, 0, 1, 1], [], []>} : vector<65x16xf32>, vector<16x8xf32>, vector<65x8xf32> -> vector<65x8xf32>
    %3 = vector.extract_strided_slice %2 {offsets = [0, 0], sizes = [32, 8], strides = [1, 1]} : vector<65x8xf32> to vector<32x8xf32>
    %c0_3 = arith.constant 0 : index
    %c0_4 = arith.constant 0 : index
    %4 = vector.load %arg5[%c0_3, %c0_4] : memref<32x1xf32, #tpu.memory_space<vmem>>, vector<32x1xf32>
    %5 = vector.broadcast %4 : vector<32x1xf32> to vector<32x8xf32>
    %6 = arith.addf %3, %5 : vector<32x8xf32>
    %7 = arith.mulf %6, %6 : vector<32x8xf32>
    %c0_5 = arith.constant 0 : index
    %c0_6 = arith.constant 0 : index
    %8 = vector.load %arg3[%c0_5, %c0_6] : memref<32x32xf32, #tpu.memory_space<vmem>>, vector<32x32xf32>
    %cst_7 = arith.constant dense<0.000000e+00> : vector<32x8xf32>
    %9 = tpu.matmul %8, %7, %cst_7 {dimension_numbers = #tpu.dot_dimension_numbers<[1], [0], [0], [1], [0, 0, 1, 1], [], []>} : vector<32x32xf32>, vector<32x8xf32>, vector<32x8xf32> -> vector<32x8xf32>
    %c0_8 = arith.constant 0 : index
    %c0_9 = arith.constant 0 : index
    %10 = vector.load %arg6[%c0_8, %c0_9] : memref<32x1xf32, #tpu.memory_space<vmem>>, vector<32x1xf32>
    %11 = vector.broadcast %10 : vector<32x1xf32> to vector<32x8xf32>
    %12 = arith.addf %9, %11 : vector<32x8xf32>
    %13 = vector.extract_strided_slice %2 {offsets = [32, 0], sizes = [32, 8], strides = [1, 1]} : vector<65x8xf32> to vector<32x8xf32>
    %14 = arith.addf %12, %13 : vector<32x8xf32>
    %15 = arith.mulf %14, %14 : vector<32x8xf32>
    %16 = arith.addf %15, %7 : vector<32x8xf32>
    %17 = arith.addf %7, %16 : vector<32x8xf32>
    %c0_10 = arith.constant 0 : index
    %c0_11 = arith.constant 0 : index
    %18 = vector.load %arg4[%c0_10, %c0_11] : memref<32x1xf32, #tpu.memory_space<vmem>>, vector<32x1xf32>
    %19 = vector.broadcast %18 : vector<32x1xf32> to vector<32x8xf32>
    %20 = arith.mulf %16, %19 : vector<32x8xf32>
    %21 = arith.addf %17, %20 : vector<32x8xf32>
    %cst_12 = arith.constant dense<0.000000e+00> : vector<8xf32>
    %22 = vector.multi_reduction <add>, %21, %cst_12 [0] : vector<32x8xf32> to vector<8xf32>
    %23 = vector.shape_cast %22 : vector<8xf32> to vector<1x8xf32>
    %c0_13 = arith.constant 0 : index
    %c0_14 = arith.constant 0 : index
    %24 = vector.load %arg7[%c0_13, %c0_14] : memref<1x1xf32, #tpu.memory_space<vmem>>, vector<1x1xf32>
    %25 = vector.broadcast %24 : vector<1x1xf32> to vector<1x8xf32>
    %26 = arith.addf %23, %25 : vector<1x8xf32>
    %27 = vector.extract_strided_slice %2 {offsets = [64, 0], sizes = [1, 8], strides = [1, 1]} : vector<65x8xf32> to vector<1x8xf32>
    %28 = arith.addf %26, %27 : vector<1x8xf32>
    %c0_15 = arith.constant 0 : index
    %c0_16 = arith.constant 0 : index
    %29 = vector.load %arg8[%c0_15, %c0_16] : memref<1x8xf32, #tpu.memory_space<vmem>>, vector<1x8xf32>
    tpu.vector_store %arg8[%c0_15, %c0_16], %28 {strides = array<i32>} : memref<1x8xf32, #tpu.memory_space<vmem>>, vector<1x8xf32>,
    return
  }
  func.func @transform_0(%arg0: i32) -> (i32, i32) {
    %c0_i32 = arith.constant 0 : i32
    %c0_i32_0 = arith.constant 0 : i32
    return %c0_i32, %arg0 : i32, i32
  }
  func.func @transform_1(%arg0: i32) -> (i32, i32) {
    %c0_i32 = arith.constant 0 : i32
    %c0_i32_0 = arith.constant 0 : i32
    %c0_i32_1 = arith.constant 0 : i32
    return %c0_i32, %c0_i32_0 : i32, i32
  }
  func.func @transform_2(%arg0: i32) -> (i32, i32) {
    %c0_i32 = arith.constant 0 : i32
    %c0_i32_0 = arith.constant 0 : i32
    %c0_i32_1 = arith.constant 0 : i32
    return %c0_i32, %c0_i32_0 : i32, i32
  }
  func.func @transform_3(%arg0: i32) -> (i32, i32) {
    %c0_i32 = arith.constant 0 : i32
    %c0_i32_0 = arith.constant 0 : i32
    %c0_i32_1 = arith.constant 0 : i32
    return %c0_i32, %c0_i32_0 : i32, i32
  }
  func.func @transform_4(%arg0: i32) -> (i32, i32) {
    %c0_i32 = arith.constant 0 : i32
    %c0_i32_0 = arith.constant 0 : i32
    %c0_i32_1 = arith.constant 0 : i32
    return %c0_i32, %c0_i32_0 : i32, i32
  }
  func.func @transform_5(%arg0: i32) -> (i32, i32) {
    %c0_i32 = arith.constant 0 : i32
    %c0_i32_0 = arith.constant 0 : i32
    %c0_i32_1 = arith.constant 0 : i32
    return %c0_i32, %c0_i32_0 : i32, i32
  }
  func.func @transform_6(%arg0: i32) -> (i32, i32) {
    %c0_i32 = arith.constant 0 : i32
    %c0_i32_0 = arith.constant 0 : i32
    %c0_i32_1 = arith.constant 0 : i32
    return %c0_i32, %c0_i32_0 : i32, i32
  }
  func.func @transform_7(%arg0: i32) -> (i32, i32) {
    %c0_i32 = arith.constant 0 : i32
    %c0_i32_0 = arith.constant 0 : i32
    return %c0_i32, %arg0 : i32, i32
  }
}

</mosaic_0001>

<bundles_post_ra>
// kernel: tpu_custom_call.1
= control target key start
LH: loop header
LB: loop body
LE: loop exit
PB: predicated region body
PF: predicated region fallthrough
CT: control target
= control target key end

     0   :  { %s717_s0 = inlined_call_operand.vmem [shape: f32[16,8], index: 0, kind: input, shape index: {}]   ;;  %s718_s1 = inlined_call_operand.vmem [shape: f32[65,16], index: 1, kind: input, shape index: {}]   ;;  %s719_s2 = inlined_call_operand.vmem [shape: f32[32,32], index: 2, kind: input, shape index: {}]   ;;  %s720_s3 = inlined_call_operand.vmem [shape: f32[32,1], index: 3, kind: input, shape index: {}]   ;;  %s721_s4 = inlined_call_operand.vmem [shape: f32[32,1], index: 4, kind: input, shape index: {}]   ;;  %s722_s5 = inlined_call_operand.vmem [shape: f32[32,1], index: 5, kind: input, shape index: {}]   ;;  %s723_s6 = inlined_call_operand.<no memory space> [shape: f32[1,1], index: 6, kind: input, shape index: {}]   ;;  %s724_s7 = inlined_call_operand.hbm [shape: f32[1,8], index: 7, kind: output, shape index: {}]  }
   0x1   :  { %v12_v0 = vstv %s723_s6 }
   0x2   :  { %13 = vst [vmem:[#allocation2] sm:$0x1] %v12_v0 }
   0x3   :  { %v29_v1 = vld [vmem:[%s717_s0] sm:$0xff]  ;;  %v30_v2 = vld [vmem:[%s717_s0 + $0x8] sm:$0xff]  ;;  %v547_v3 = vmov 0.0|0.0   ;;  %vm548_vm0 = vmmov 0   ;;  %v549_v5 = vmov 0.0   ;;  %v550_v6 = vmov 0  }
   0x4   :  { %503 = vmatprep.subr.bf16.mxu0 %v547_v3  ;;  %v504_v4 = vpack.c.bf16 %v30_v2, %v29_v1  ;;  %462 = vmatprep.mubr.msk.f32.mxu0 %vm548_vm0, %v549_v5  ;;  %v178_v7 = vld [vmem:[%s721_s4] sm:$0xff]  ;;  %vm40_vm1 = vcmask 130048   ;;  %v180_v9 = vld [vmem:[%s721_s4 + $0x10] sm:$0xff]  ;;  %v179_v10 = vld [vmem:[%s721_s4 + $0x8] sm:$0xff] }
   0x5   :  { %521 = vset.pattern.permute.xlu0 %v550_v6  ;;  %522 = vset.pattern.permute.xlu1 %v550_v6  ;;  %v31_v8 = vld [vmem:[%s718_s1] sm:$0xff]  ;;  %v181_v11 = vld [vmem:[%s721_s4 + $0x18] sm:$0xff] }
   0x6   :  { %505 = vmatpush3.bf16.msra.mxu0 %v504_v4  ;;  %184 = vperm.xlu0 %521, %v178_v7  }
   0x7   :  { %194 = vperm.xlu1 %522, %v180_v9   ;;  %514 = vmatprep.subr.bf16.mxu1 %v547_v3 }
   0x8   :  { %515 = vmatpush3.bf16.msra.mxu1 %v504_v4  ;;  %480 = vmatprep.mubr.msk.f32.mxu1 %vm548_vm0, %v549_v5 }
   0x9   :  { %463 = vmatmul.mubr.msk.f32.vlgmr.msra.gmra.mrb[0].mxu0 %vm40_vm1, %v31_v8 }
   0xa   :  { %14 = vsyncpa [#allocation4], 0  ;;  %465 = vmatprep.mubr.msk.f32.mxu0 %vm548_vm0, %v549_v5  ;;  %v32_v12 = vld [vmem:[%s718_s1 + $0x8] sm:$0xff]  ;;  %189 = vperm.xlu0 %521, %v179_v10   ;;  %v214_v13 = vld [vmem:[%s722_s5] sm:$0xff]  ;;  %vm238_vm2 = vcmask 261120   ;;  %vm384_vm3 = vcmask 64512  }
   0xb   :  { %199 = vperm.xlu1 %522, %v181_v11   ;;  %v215_v14 = vld [vmem:[%s722_s5 + $0x8] sm:$0xff]  ;;  %v33_v15 = vld [vmem:[%s718_s1 + $0x10] sm:$0xff]  ;;  %v217_v17 = vld [vmem:[%s722_s5 + $0x18] sm:$0xff]  ;;  %vm410_vm4 = vcmask 57344  }
   0xc   :  { %v216_v16 = vld [vmem:[%s722_s5 + $0x10] sm:$0xff]  ;;  %v34_v18 = vld [vmem:[%s718_s1 + $0x18] sm:$0xff]  ;;  %v352_v19 = vld [vmem:[%s720_s3] sm:$0xff] }
   0xd   :  { %466 = vmatmul.mubr.msk.f32.gmra.mrb[2].mxu0 %vm40_vm1, %v32_v12  ;;  %v353_v20 = vld [vmem:[%s720_s3 + $0x8] sm:$0xff]  ;;  %v354_v21 = vld [vmem:[%s720_s3 + $0x10] sm:$0xff]  ;;  %v355_v22 = vld [vmem:[%s720_s3 + $0x18] sm:$0xff] }
   0xe   :  { %468 = vmatprep.mubr.msk.f32.mxu0 %vm548_vm0, %v549_v5  ;;  %220 = vperm.xlu0 %521, %v214_v13   ;;  %v398_v23 = vld [vmem:[#allocation2] sm:$0x1]  ;;  %v37_v24 = vld [vmem:[%s718_s1 + $0x30] sm:$0xff]  ;;  %v38_v25 = vld [vmem:[%s718_s1 + $0x38] sm:$0xff] }
   0xf   :  { %225 = vperm.xlu1 %522, %v215_v14   ;;  %481 = vmatmul.mubr.msk.f32.vlgmr.msra.gmra.mrb[0].mxu1 %vm40_vm1, %v37_v24  ;;  %v39_v26 = vld [vmem:[%s718_s1 + $0x40] sm:$0x1]  ;;  %v36_v29 = vld [vmem:[%s718_s1 + $0x28] sm:$0xff]  ;;  %v212_v53 = vld [vmem:[%s719_s2 + $0x10] sm:$0xff] }
  0x10   :  { %483 = vmatprep.mubr.msk.f32.mxu1 %vm548_vm0, %v549_v5  ;;  %v35_v27 = vld [vmem:[%s718_s1 + $0x20] sm:$0xff]  ;;  %v211_v52 = vld [vmem:[%s719_s2 + $0x8] sm:$0xff]  ;;  %v213_v54 = vld [vmem:[%s719_s2 + $0x18] sm:$0xff] }
  0x11   :  { %469 = vmatmul.mubr.msk.f32.gmra.mrb[4].mxu0 %vm40_vm1, %v33_v15  ;;  %v210_v28 = vld [vmem:[%s719_s2] sm:$0xff]  ;;  %s551_s2 = smov [#allocation3]  }
  0x12   :  { %471 = vmatprep.mubr.msk.f32.mxu0 %vm548_vm0, %v549_v5  ;;  %230 = vperm.xlu0 %521, %v216_v16   ;;  %s418_s25 = sshll.u32 %s551_s2, 4  ;;  %s419_s25 = int_to_ptr.vmem [resolvable:$true] %s418_s25 }
  0x13   :  { %235 = vperm.xlu1 %522, %v217_v17   ;;  %484 = vmatmul.mubr.msk.f32.gmra.mrb[2].mxu1 %vm40_vm1, %v38_v25  ;;  %s523_s26 = scalar_lea.vmem %s419_s25, 16  ;;  %s527_s27 = scalar_lea.vmem %s419_s25, 32 }
  0x14   :  { %486 = vmatprep.mubr.msk.f32.mxu1 %vm548_vm0, %v549_v5  ;;  %p524_p0 = scmp.ne.s32.totalorder %s419_s25, %s523_s26  ;;  %p528_p1 = scmp.lt.s32.totalorder %s419_s25, %s419_s25 }
  0x15   :  { %472 = vmatmul.mubr.msk.f32.gmra.mrb[6].mxu0 %vm40_vm1, %v34_v18  ;;  %p529_p2 = scmp.lt.s32.totalorder %s527_s27, %s523_s26 }
  0x16   :  { %358 = vperm.xlu0 %521, %v352_v19   ;;  %474 = vmatprep.mubr.msk.f32.mxu0 %vm548_vm0, %v549_v5 }
  0x17   :  { %363 = vperm.xlu1 %522, %v353_v20   ;;  %487 = vmatmul.mubr.msk.f32.gmra.mrb[4].mxu1 %vm40_vm1, %v39_v26  ;;  %p530_p3 = por %p529_p2, %p528_p1 }
  0x18   :  { %497 = vmatprep.mubr.msk.f32.mxu1 %vm238_vm2, %v210_v28 }
  0x19   :  { %475 = vmatmul.mubr.msk.f32.gmra.mrb[8].mxu0 %vm40_vm1, %v35_v27  ;;  %p531_p4 = pnand %p530_p3, %p524_p0 }
  0x1a   :  { %368 = vperm.xlu0 %521, %v354_v21   ;;  %477 = vmatprep.mubr.msk.f32.mxu0 %vm548_vm0, %v549_v5 }
  0x1b   :  { %373 = vperm.xlu1 %522, %v355_v22  }
  0x1d   :  { %478 = vmatmul.mubr.msk.f32.gmra.mrb[10].mxu0 %vm40_vm1, %v36_v29 }
  0x1e   :  { %401 = vperm.xlu0 %521, %v398_v23  }
  0x85   :  { %v185_v30 = vpop.permute.xlu0 %184 }
  0x86   :  { %v195_v38 = vpop.permute.xlu1 %194 }
  0x89   :  { %v190_v34 = vpop.permute.xlu0 %189 }
  0x8a   :  { %v200_v45 = vpop.permute.xlu1 %199 }
  0x8d   :  { %v221_v2 = vpop.permute.xlu0 %220 }
  0x8e   :  { %v226_v1 = vpop.permute.xlu1 %225 }
  0x91   :  { %v231_v5 = vpop.permute.xlu0 %230 }
  0x92   :  { %v236_v3 = vpop.permute.xlu1 %235 }
  0x95   :  { %v359_v18 = vpop.permute.xlu0 %358 }
  0x96   :  { %v364_v15 = vpop.permute.xlu1 %363 }
  0xdc   :  { %v134_v31 = vpop.f32.mrb[0].mxu0 }
  0xdd   :  { %v464_v32 = vpop.f32.mrb[1].mxu0  ;;  %v202_v33 = vadd.f32 %v185_v30, %v134_v31  ;;  %v374_v31 = vpop.permute.xlu1 %373 }
  0xdf   :  { %v206_v39 = vmul.f32 %v202_v33, %v202_v33 }
  0xe0   :  { %v139_v35 = vpop.f32.mrb[2].mxu0 }
  0xe1   :  { %v203_v36 = vadd.f32 %v190_v34, %v139_v35  ;;  %v467_v37 = vpop.f32.mrb[3].mxu0  ;;  %v369_v34 = vpop.permute.xlu0 %368 }
  0xe2   :  { %v164_v55 = vpop.f32.mrb[0].mxu1 }
  0xe3   :  { %v207_v40 = vmul.f32 %v203_v36, %v203_v36  ;;  %v482_v56 = vpop.f32.mrb[1].mxu1 }
  0xe4   :  { %v144_v41 = vpop.f32.mrb[4].mxu0 }
  0xe5   :  { %v470_v42 = vpop.f32.mrb[5].mxu0  ;;  %v506_v43 = vpack.c.bf16 %v207_v40, %v206_v39  ;;  %v204_v44 = vadd.f32 %v195_v38, %v144_v41  ;;  %v402_v56 = vpop.permute.xlu0 %401 }
  0xe6   :  { %v169_v57 = vpop.f32.mrb[2].mxu1 }
  0xe7   :  { %507 = vmatprep.subr.bf16.mxu1 %v506_v43  ;;  %v208_v49 = vmul.f32 %v204_v44, %v204_v44  ;;  %v485_v58 = vpop.f32.mrb[3].mxu1 }
  0xe8   :  { %v149_v46 = vpop.f32.mrb[6].mxu0  ;;  %509 = vmatpush3.bf16.msra.mxu1 %v506_v43 }
  0xe9   :  { %v205_v47 = vadd.f32 %v200_v45, %v149_v46  ;;  %v473_v48 = vpop.f32.mrb[7].mxu0 }
  0xea   :  { %v698_v59 = vpop.f32.mrb[4].mxu1 }
  0xeb   :  { %v209_v50 = vmul.f32 %v205_v47, %v205_v47  ;;  %v488_v60 = vpop.f32.mrb[5].mxu1  ;;  %v404_v47 = vlaneseq }
  0xec   :  { %v154_v61 = vpop.f32.mrb[8].mxu0 }
  0xed   :  { %v510_v51 = vpack.c.bf16 %v209_v50, %v208_v49  ;;  %v476_v62 = vpop.f32.mrb[9].mxu0 }
  0xef   :  { %511 = vmatprep.subr.bf16.mxu1 %v510_v51 }
  0xf0   :  { %513 = vmatpush3.bf16.msra.mxu1 %v510_v51  ;;  %v159_v63 = vpop.f32.mrb[10].mxu0 }
  0xf1   :  { %v479_v0 = vpop.f32.mrb[11].mxu0 }
  0xf3   :  { %498 = vmatmul.mubr.msk.f32.vlgmr.msra.gmra.mrb[6].mxu1 %vm238_vm2, %v211_v52  ;;  %v405_v52 = vshrl.u32 %v404_v47, 7 }
  0xf4   :  { %500 = vmatprep.mubr.msk.f32.mxu1 %vm238_vm2, %v212_v53 }
  0xf7   :  { %501 = vmatmul.mubr.msk.f32.gmra.mrb[8].mxu1 %vm238_vm2, %v213_v54 }
 0x1c6   :  { %v499_v4 = vpop.f32.mrb[6].mxu1 }
 0x1c7   :  { %v323_v6 = vadd.f32 %v499_v4, %v226_v1  ;;  %v317_v7 = vpop.f32.mrb[7].mxu1 }
 0x1c8   :  { %v318_v8 = vadd.f32 %v317_v7, %v221_v2 }
 0x1c9   :  { %v337_v9 = vadd.f32 %v323_v6, %v159_v63 }
 0x1ca   :  { %v336_v10 = vadd.f32 %v318_v8, %v154_v61  ;;  %v502_v11 = vpop.f32.mrb[8].mxu1 }
 0x1cb   :  { %v341_v12 = vmul.f32 %v337_v9, %v337_v9  ;;  %v333_v13 = vadd.f32 %v502_v11, %v236_v3  ;;  %v327_v14 = vpop.f32.mrb[9].mxu1 }
 0x1cc   :  { %v340_v16 = vmul.f32 %v336_v10, %v336_v10  ;;  %v328_v17 = vadd.f32 %v327_v14, %v231_v5 }
 0x1cd   :  { %v345_v19 = vadd.f32 %v341_v12, %v207_v40  ;;  %v339_v20 = vadd.f32 %v333_v13, %v169_v57 }
 0x1ce   :  { %v344_v21 = vadd.f32 %v340_v16, %v206_v39  ;;  %v338_v22 = vadd.f32 %v328_v17, %v164_v55 }
 0x1cf   :  { %v349_v23 = vadd.f32 %v345_v19, %v207_v40  ;;  %v377_v24 = vmul.f32 %v364_v15, %v345_v19  ;;  %v343_v25 = vmul.f32 %v339_v20, %v339_v20 }
 0x1d0   :  { %v348_v26 = vadd.f32 %v344_v21, %v206_v39  ;;  %v376_v27 = vmul.f32 %v359_v18, %v344_v21  ;;  %v342_v28 = vmul.f32 %v338_v22, %v338_v22 }
 0x1d1   :  { %v381_v29 = vadd.f32 %v377_v24, %v349_v23  ;;  %v347_v30 = vadd.f32 %v343_v25, %v209_v50 }
 0x1d2   :  { %v380_v32 = vadd.f32 %v376_v27, %v348_v26  ;;  %v346_v33 = vadd.f32 %v342_v28, %v208_v49 }
 0x1d3   :  { %v386_v35 = vsel %vm384_vm3, %v381_v29, 0.0  ;;  %v351_v36 = vadd.f32 %v347_v30, %v209_v50  ;;  %v379_v37 = vmul.f32 %v374_v31, %v347_v30  ;;  %v406_v50 = vsub.s32 0, %v405_v52 }
 0x1d4   :  { %v385_v38 = vsel %vm384_vm3, %v380_v32, 0.0  ;;  %v350_v41 = vadd.f32 %v346_v33, %v208_v49  ;;  %v378_v40 = vmul.f32 %v369_v34, %v346_v33 }
 0x1d5   :  { %v387_v42 = vadd.f32 %v386_v35, %v385_v38  ;;  %v383_v43 = vadd.f32 %v379_v37, %v351_v36  ;;  %v407_v49 = vrot.slane %v402_v56, %v406_v50 }
 0x1d6   :  { %v382_v39 = vadd.f32 %v378_v40, %v350_v41 }
 0x1d7   :  { %v390_v46 = vsel %vm384_vm3, %v383_v43, 0.0 }
 0x1d8   :  { %v388_v44 = vsel %vm384_vm3, %v382_v39, 0.0 }
 0x1d9   :  { %v389_v45 = vadd.f32 %v388_v44, %v387_v42 }
 0x1db   :  { %v391_v48 = vadd.f32 %v390_v46, %v389_v45 }
 0x1dd   :  { %v392_v51 = vrot.slane %v391_v48, 4 }
 0x1df   :  { %v393_v53 = vadd.f32 %v392_v51, %v391_v48 }
 0x1e1   :  { %v394_v54 = vrot.slane %v393_v53, 2 }
 0x1e3   :  { %v395_v55 = vadd.f32 %v394_v54, %v393_v53 }
 0x1e5   :  { %v396_v57 = vrot.slane %v395_v55, 1 }
 0x1e7   :  { %v397_v58 = vadd.f32 %v396_v57, %v395_v55 }
 0x1e9   :  { %v408_v60 = vadd.f32 %v407_v49, %v397_v58 }
 0x1eb   :  { %v409_v61 = vadd.f32 %v408_v60, %v698_v59 }
 0x1ed   :  { %411 = vst.msk [vmem:[#allocation3] sm:$0x1] %vm410_vm4, %v409_v61 }
 0x1ee   :  { %534 = shalt.err (!%p531_p4)
}
 0x1ef   :  { %s535_s30 = scalar_lea.hbm %s724_s7, 16 }
 0x1f0   :  { %p536_p5 = scmp.ne.s32.totalorder %s724_s7, %s535_s30  ;;  %p539_p6 = scmp.lt.u32.totalorder %s535_s30, %s724_s7 }
 0x1f2   :  { %p541_p7 = pnand %p539_p6, %p536_p5 }
 0x1f4   :  { %544 = shalt.err (!%p541_p7)
}
 0x1f5   :  { %421 = dma.vmem_to_hbm [thread:$0]  %s419_s25, 16, %s724_s7, [#allocation4]  }
 0x1f6   :  { %545 = dma.done.wait [#allocation4], 16  }
 0x1f7   :  { %546 = vsyncadd [#allocation4], 4294967280 }
 0x1f8   :  { %425 = vsyncpa [#allocation4], 1 }

</bundles_post_ra>
